<compile_context>
chip_gen: v7x
topology: tpu7x:2x2x1
jax: 0.10.0
libtpu: 0.0.40
codegen_flags: <defaults>
</compile_context>

<pallas_src>
import functools

import jax
import jax.numpy as jnp
from jax import lax
from jax.experimental import pallas as pl
from jax.experimental.pallas import tpu as pltpu


# ---------------------------------------------------------------------------
# Kernels
# ---------------------------------------------------------------------------

_DOT_DIMS = (((1,), (1,)), ((), ()))  # contract dim 1 of lhs with dim 1 of rhs
# hidden tile: (tm, tk); embedding tile: (tn, tk); no in-kernel transpose.


def _proj_kernel_bias(h_ref, e_ref, b_ref, o_ref):
    """Full-H contraction (no reduction grid axis): one (tm, tn) output tile."""
    acc = lax.dot_general(
        h_ref[...], e_ref[...],
        dimension_numbers=_DOT_DIMS,
        preferred_element_type=jnp.float32,
    )
    o_ref[...] = (acc + b_ref[...]).astype(o_ref.dtype)


def _proj_kernel_nobias(h_ref, e_ref, o_ref):
    o_ref[...] = lax.dot_general(
        h_ref[...], e_ref[...],
        dimension_numbers=_DOT_DIMS,
        preferred_element_type=jnp.float32,
    ).astype(o_ref.dtype)


def _proj_kernel_bias_k(h_ref, e_ref, b_ref, o_ref, acc_ref):
    """K-tiled fallback (very large H / small VMEM)."""
    k = pl.program_id(2)
    part = lax.dot_general(
        h_ref[...], e_ref[...],
        dimension_numbers=_DOT_DIMS,
        preferred_element_type=jnp.float32,
    )

    @pl.when(k == 0)
    def _():
        acc_ref[...] = part          # assign: skips zero-fill + RMW at k==0

    @pl.when(k > 0)
    def _():
        acc_ref[...] += part

    @pl.when(k == pl.num_programs(2) - 1)
    def _():
        o_ref[...] = (acc_ref[...] + b_ref[...]).astype(o_ref.dtype)


def _proj_kernel_nobias_k(h_ref, e_ref, o_ref, acc_ref):
    k = pl.program_id(2)
    part = lax.dot_general(
        h_ref[...], e_ref[...],
        dimension_numbers=_DOT_DIMS,
        preferred_element_type=jnp.float32,
    )

    @pl.when(k == 0)
    def _():
        acc_ref[...] = part

    @pl.when(k > 0)
    def _():
        acc_ref[...] += part

    @pl.when(k == pl.num_programs(2) - 1)
    def _():
        o_ref[...] = acc_ref[...].astype(o_ref.dtype)


# ---------------------------------------------------------------------------
# Tiling / VMEM helpers
# ---------------------------------------------------------------------------

def _round_up(x: int, m: int) -> int:
    return ((x + m - 1) // m) * m


def _sublane_pack(dtype) -> int:
    """Rows per native sublane tile: 8 (f32), 16 (bf16), 32 (int8/fp8)."""
    return max(8, 32 // jnp.dtype(dtype).itemsize)


def _physical_vmem_bytes() -> int:
    try:
        return int(pltpu.get_tpu_info().vmem_capacity_bytes)
    except Exception:
        pass
    try:
        kind = jax.devices()[0].device_kind.lower()
        if "v5" in kind or "v6" in kind:
            return 128 << 20
    except Exception:
        pass
    return 64 << 20  # conservative (v7x-sized)


def _vmem_budget_bytes() -> int:
    phys = _physical_vmem_bytes()
    # Leave headroom for Mosaic internal scratch / pipelining slack:
    # 128 MiB (v5e/v6e) -> ~104 MiB usable, 64 MiB (v7x) -> 48 MiB usable.
    return int(min(phys - (16 << 20), int(phys * 0.82)))


def _footprint_bytes(tm, tn, tk, h_bytes, e_bytes, out_bytes, k_tiled) -> int:
    fp = 2 * (tm * tk * h_bytes + tn * tk * e_bytes)   # double-buffered inputs
    fp += 2 * tn * 4                                   # bias tile (worst case f32)
    fp += 2 * tm * tn * out_bytes                      # double-buffered output
    if k_tiled:
        fp += tm * tn * 4                              # f32 accumulator scratch
    return fp


def _plan_vocab_hidden(V, H, h_bytes, e_bytes, out_bytes, budget):
    """Pick (tn, tk, V_pad, H_pad) from V/H/dtypes only, so the padded weight
    can be cached and reused across calls with varying token counts."""
    V128 = _round_up(V, 128)
    H128 = _round_up(H, 128)
    ref_tm = 256  # reference row tile for the feasibility check

    # Preferred: tk == full hidden (no reduction axis; hidden tile resident).
    for tn in (512, 256, 128):
        tn = min(tn, V128)
        if _footprint_bytes(ref_tm, tn, H128, h_bytes, e_bytes, out_bytes,
                            k_tiled=False) <= budget:
            return tn, H128, _round_up(V, tn), H128

    # Fallback: k-tiled accumulation (huge H and/or small VMEM budget).
    for tn in (512, 256, 128):
        tn = min(tn, V128)
        for tk in (512, 256, 128):
            if _footprint_bytes(ref_tm, tn, tk, h_bytes, e_bytes, out_bytes,
                                k_tiled=True) <= budget:
                return tn, tk, _round_up(V, tn), _round_up(H, tk)

    return 128, 128, V128, H128


def _pick_tm(T, tn, tk, h_bytes, e_bytes, out_bytes, budget, k_tiled, sub):
    """Largest row tile that fits VMEM; decode-sized T -> a single i-step."""
    def fits(tm):
        return _footprint_bytes(tm, tn, tk, h_bytes, e_bytes, out_bytes,
                                k_tiled) <= budget

    t_su = _round_up(max(T, 1), sub)
    if t_su <= 1024 and fits(t_su):
        return t_su                      # one i-step: weight streamed once
    for cand in (1024, 512, 256, 128, 64, 32):
        if cand >= sub and cand % sub == 0 and fits(cand):
            return cand
    return sub


# ---------------------------------------------------------------------------
# pallas_call wrapper
# ---------------------------------------------------------------------------

@functools.partial(jax.jit, static_argnames=("tm", "tn", "tk"))
def _logits_matmul(hidden, embedding, bias, *, tm, tn, tk):
    """logits = hidden @ embedding.T (+ bias), all dims already tile-padded."""
    T, H = hidden.shape
    V, H2 = embedding.shape
    assert H == H2
    assert T % tm == 0 and V % tn == 0 and H % tk == 0

    out_dtype = hidden.dtype
    h_b = jnp.dtype(hidden.dtype).itemsize
    e_b = jnp.dtype(embedding.dtype).itemsize
    o_b = jnp.dtype(out_dtype).itemsize
    k_tiled = tk != H

    fp = _footprint_bytes(tm, tn, tk, h_b, e_b, o_b, k_tiled)
    budget = _vmem_budget_bytes()
    vmem_limit = int(min(max(fp + (8 << 20), 32 << 20), budget))

    if not k_tiled:
        grid = (T // tm, V // tn)
        # Hidden block index constant across j -> tile stays resident while
        # the embedding streams through the vocab sweep.
        h_spec = pl.BlockSpec((tm, H), lambda i, j: (i, 0))
        e_spec = pl.BlockSpec((tn, H), lambda i, j: (j, 0))
        o_spec = pl.BlockSpec((tm, tn), lambda i, j: (i, j))
        scratch = []
        dims = ("parallel", "parallel")
        if bias is None:
            kernel = _proj_kernel_nobias
            in_specs = [h_spec, e_spec]
            operands = (hidden, embedding)
        else:
            kernel = _proj_kernel_bias
            in_specs = [h_spec, e_spec,
                        pl.BlockSpec((1, tn), lambda i, j: (0, j))]
            operands = (hidden, embedding, bias.reshape(1, V))
    else:
        grid = (T // tm, V // tn, H // tk)
        h_spec = pl.BlockSpec((tm, tk), lambda i, j, k: (i, k))
        e_spec = pl.BlockSpec((tn, tk), lambda i, j, k: (j, k))
        o_spec = pl.BlockSpec((tm, tn), lambda i, j, k: (i, j))
        scratch = [pltpu.VMEM((tm, tn), jnp.float32)]
        dims = ("parallel", "parallel", "arbitrary")
        if bias is None:
            kernel = _proj_kernel_nobias_k
            in_specs = [h_spec, e_spec]
            operands = (hidden, embedding)
        else:
            kernel = _proj_kernel_bias_k
            in_specs = [h_spec, e_spec,
                        pl.BlockSpec((1, tn), lambda i, j, k: (0, j))]
            operands = (hidden, embedding, bias.reshape(1, V))

    return pl.pallas_call(
        kernel,
        out_shape=jax.ShapeDtypeStruct((T, V), out_dtype),
        grid_spec=pltpu.PrefetchScalarGridSpec(
            num_scalar_prefetch=0,
            grid=grid,
            in_specs=in_specs,
            out_specs=o_spec,
            scratch_shapes=scratch,
        ),
        compiler_params=pltpu.CompilerParams(
            dimension_semantics=dims,
            vmem_limit_bytes=vmem_limit,
        ),
    )(*operands)


# ---------------------------------------------------------------------------
# Module wrapper (mirrors the PyTorch Projection forward)
# ---------------------------------------------------------------------------

class Projection:
    """JAX/Pallas port of TD_Pipe Projection."""

    def __init__(self, vocab_size: int):
        self.vocab_size = vocab_size
        self._weight_cache = {}

    def _padded_weight(self, embedding, embedding_bias, h_dtype):
        """Pad the weight (and bias) to tile multiples ONCE and cache it."""
        V, H = embedding.shape
        key = (id(embedding),
               None if embedding_bias is None else id(embedding_bias),
               V, H, str(embedding.dtype), str(jnp.dtype(h_dtype)))
        hit = self._weight_cache.get(key)
        if hit is not None:
            return hit

        budget = _vmem_budget_bytes()
        h_b = jnp.dtype(h_dtype).itemsize
        e_b = jnp.dtype(embedding.dtype).itemsize
        tn, tk, V_pad, H_pad = _plan_vocab_hidden(V, H, h_b, e_b, h_b, budget)

        emb = embedding
        if (V_pad, H_pad) != (V, H):
            emb = jnp.pad(embedding, ((0, V_pad - V), (0, H_pad - H)))
        bias = embedding_bias
        if bias is not None and V_pad != V:
            bias = jnp.pad(bias, (0, V_pad - V))

        # Keep refs to the originals so the id()-based key stays valid.
        entry = (tn, tk, V_pad, H_pad, emb, bias, embedding, embedding_bias)
        self._weight_cache[key] = entry
        return entry

    def __call__(self, embedding, hidden_states, selected_token_indices,
                 is_prompt, embedding_bias=None):
        # 1. _prune_hidden_states (index_select on dim 0).
        # TODO(synk): fuse this row gather into the kernel via
        # PrefetchScalarGridSpec(num_scalar_prefetch=1) + pl.Element on the
        # hidden BlockSpec to avoid the extra HBM pass for long prompts.
        if is_prompt:
            hidden_states = jnp.take(hidden_states, selected_token_indices,
                                     axis=0)

        T, H = hidden_states.shape
        V, H2 = embedding.shape
        assert H == H2

        # Weight padding + (tn, tk) plan: computed once per weight, cached.
        tn, tk, V_pad, H_pad, emb_p, bias_p, _, _ = self._padded_weight(
            embedding, embedding_bias, hidden_states.dtype)

        budget = _vmem_budget_bytes()
        h_b = jnp.dtype(hidden_states.dtype).itemsize
        e_b = jnp.dtype(embedding.dtype).itemsize
        sub = _sublane_pack(hidden_states.dtype)
        k_tiled = tk != H_pad
        tm = _pick_tm(T, tn, tk, h_b, e_b, h_b, budget, k_tiled, sub)
        T_pad = _round_up(max(T, 1), tm)

        # Zero padding cannot change the matmul result; padded vocab columns
        # are dropped by the final [:, :vocab_size] slice.
        if (T_pad, H_pad) != (T, H):
            hidden_states = jnp.pad(
                hidden_states, ((0, T_pad - T), (0, H_pad - H)))

        # 2. logits = hidden @ embedding.T (+ bias)  (Pallas kernel).
        logits = _logits_matmul(hidden_states, emb_p, bias_p,
                                tm=tm, tn=tn, tk=tk)

        # 3. tensor_model_parallel_gather: single-device identity.
        # TODO(synk): multi-device TP gather (shards to rank 0) not modeled.

        # 4. Drop row padding and slice to vocab_size.
        return logits[:T, : self.vocab_size]


# ---------------------------------------------------------------------------
# Self-test
# ---------------------------------------------------------------------------

if __name__ == "__main__":
    key = jax.random.PRNGKey(0)
    ks = jax.random.split(key, 12)

    # ---- Case 1: prompt path with bias (f32) -------------------------------
    H1, Vrows1, vocab1, T1 = 128, 256, 250, 16
    emb1 = jax.random.normal(ks[0], (Vrows1, H1), jnp.float32) * 0.02
    bias1 = jax.random.normal(ks[1], (Vrows1,), jnp.float32) * 0.01
    hid1 = jax.random.normal(ks[2], (T1, H1), jnp.float32)
    sel1 = jnp.array([7, 15], dtype=jnp.int32)

    proj1 = Projection(vocab1)
    out1 = jax.block_until_ready(proj1(emb1, hid1, sel1, True, bias1))
    pruned = jnp.take(hid1, sel1, axis=0)
    ref1 = (pruned @ emb1.T + bias1)[:, :vocab1]
    assert out1.shape == (2, vocab1)
    assert jnp.allclose(out1, ref1, atol=1e-4, rtol=1e-4)

    # ---- Case 1b: decode call reusing the cached, pre-padded embedding -----
    hid1b = jax.random.normal(ks[3], (5, H1), jnp.float32)
    out1b = jax.block_until_ready(proj1(emb1, hid1b, None, False, bias1))
    ref1b = (hid1b @ emb1.T + bias1)[:, :vocab1]
    assert out1b.shape == (5, vocab1)
    assert jnp.allclose(out1b, ref1b, atol=1e-4, rtol=1e-4)

    # ---- Case 2: decode path, no bias, ragged dims (exercises padding) -----
    H2, V2, T2 = 160, 1000, 40
    emb2 = jax.random.normal(ks[4], (V2, H2), jnp.float32) * 0.02
    hid2 = jax.random.normal(ks[5], (T2, H2), jnp.float32)
    proj2 = Projection(V2)
    out2 = jax.block_until_ready(proj2(emb2, hid2, None, False, None))
    ref2 = hid2 @ emb2.T
    assert out2.shape == (T2, V2)
    assert jnp.allclose(out2, ref2, atol=1e-4, rtol=1e-4)

    # ---- Case 3: bf16 prompt batch (16-row sublane pack, single i-step) ----
    H3, V3, T3 = 256, 384, 300
    emb3 = (jax.random.normal(ks[6], (V3, H3), jnp.float32) * 0.02
            ).astype(jnp.bfloat16)
    hid3 = jax.random.normal(ks[7], (T3, H3), jnp.float32).astype(jnp.bfloat16)
    proj3 = Projection(V3)
    sel3 = jnp.arange(T3, dtype=jnp.int32)
    out3 = jax.block_until_ready(proj3(emb3, hid3, sel3, True, None))
    ref3 = hid3.astype(jnp.float32) @ emb3.astype(jnp.float32).T
    assert out3.shape == (T3, V3)
    assert jnp.allclose(out3.astype(jnp.float32), ref3, atol=3e-2, rtol=3e-2)

    # ---- Case 4: exercise the k-tiled fallback kernels directly ------------
    hk = jax.random.normal(ks[8], (16, 256), jnp.float32)
    ek = jax.random.normal(ks[9], (256, 256), jnp.float32) * 0.02
    bk = jax.random.normal(ks[10], (256,), jnp.float32) * 0.01
    outk = jax.block_until_ready(
        _logits_matmul(hk, ek, bk, tm=16, tn=128, tk=128))
    assert jnp.allclose(outk, hk @ ek.T + bk, atol=1e-4, rtol=1e-4)
    outk2 = jax.block_until_ready(
        _logits_matmul(hk, ek, None, tm=16, tn=128, tk=128))
    assert jnp.allclose(outk2, hk @ ek.T, atol=1e-4, rtol=1e-4)

    print("KERNEL_OK")
</pallas_src>

<mosaic_0001>
module attributes {stable_mosaic.version = 11 : i64} {
  func.func @_proj_kernel_bias(%arg0: i32, %arg1: i32, %arg2: memref<8x128xf32, #tpu.memory_space<vmem>>, %arg3: memref<256x128xf32, #tpu.memory_space<vmem>>, %arg4: memref<1x256xf32, #tpu.memory_space<vmem>>, %arg5: memref<8x256xf32, #tpu.memory_space<vmem>>) attributes {dimension_semantics = [#tpu.dimension_semantics<parallel>, #tpu.dimension_semantics<parallel>], iteration_bounds = array<i64: 1, 1>, scalar_prefetch = 0 : i64, scratch_operands = 0 : i64, tpu.core_type = #tpu.core_type<tc>, window_params = [{transform_indices = @transform_0, window_bounds = array<i64: 8, 128>}, {transform_indices = @transform_1, window_bounds = array<i64: 256, 128>}, {transform_indices = @transform_2, window_bounds = array<i64: 1, 256>}, {transform_indices = @transform_3, window_bounds = array<i64: 8, 256>}]} {
    %c0 = arith.constant 0 : index
    %c0_0 = arith.constant 0 : index
    %0 = vector.load %arg2[%c0, %c0_0] : memref<8x128xf32, #tpu.memory_space<vmem>>, vector<8x128xf32>
    %c0_1 = arith.constant 0 : index
    %c0_2 = arith.constant 0 : index
    %1 = vector.load %arg3[%c0_1, %c0_2] : memref<256x128xf32, #tpu.memory_space<vmem>>, vector<256x128xf32>
    %cst = arith.constant dense<0.000000e+00> : vector<8x256xf32>
    %2 = tpu.matmul %0, %1, %cst {dimension_numbers = #tpu.dot_dimension_numbers<[1], [1], [0], [0], [0, 0, 1, 0], [], []>} : vector<8x128xf32>, vector<256x128xf32>, vector<8x256xf32> -> vector<8x256xf32>
    %c0_3 = arith.constant 0 : index
    %c0_4 = arith.constant 0 : index
    %3 = vector.load %arg4[%c0_3, %c0_4] : memref<1x256xf32, #tpu.memory_space<vmem>>, vector<1x256xf32>
    %4 = vector.broadcast %3 : vector<1x256xf32> to vector<8x256xf32>
    %5 = arith.addf %2, %4 : vector<8x256xf32>
    %c0_5 = arith.constant 0 : index
    %c0_6 = arith.constant 0 : index
    %6 = vector.load %arg5[%c0_5, %c0_6] : memref<8x256xf32, #tpu.memory_space<vmem>>, vector<8x256xf32>
    tpu.vector_store %arg5[%c0_5, %c0_6], %5 {strides = array<i32>} : memref<8x256xf32, #tpu.memory_space<vmem>>, vector<8x256xf32>,
    return
  }
  func.func @transform_0(%arg0: i32, %arg1: i32) -> (i32, i32) {
    %c0_i32 = arith.constant 0 : i32
    %c0_i32_0 = arith.constant 0 : i32
    return %arg0, %c0_i32 : i32, i32
  }
  func.func @transform_1(%arg0: i32, %arg1: i32) -> (i32, i32) {
    %c0_i32 = arith.constant 0 : i32
    %c0_i32_0 = arith.constant 0 : i32
    return %arg1, %c0_i32 : i32, i32
  }
  func.func @transform_2(%arg0: i32, %arg1: i32) -> (i32, i32) {
    %c0_i32 = arith.constant 0 : i32
    %c0_i32_0 = arith.constant 0 : i32
    return %c0_i32, %arg1 : i32, i32
  }
  func.func @transform_3(%arg0: i32, %arg1: i32) -> (i32, i32) {
    %c0_i32 = arith.constant 0 : i32
    return %arg0, %arg1 : i32, i32
  }
}

</mosaic_0001>

<bundles_post_ra>
// kernel: _logits_matmul.1
= control target key start
LH: loop header
LB: loop body
LE: loop exit
PB: predicated region body
PF: predicated region fallthrough
CT: control target
= control target key end

     0   :  { %8 = vsyncpa [#allocation3], 0  ;;  %s389_s0 = inlined_call_operand.hbm [shape: f32[8,128], index: 0, kind: input, shape index: {}]   ;;  %s390_s1 = inlined_call_operand.hbm [shape: f32[256,128], index: 1, kind: input, shape index: {}]   ;;  %s391_s2 = inlined_call_operand.vmem [shape: f32[1,256], index: 2, kind: input, shape index: {}]   ;;  %s392_s3 = inlined_call_operand.hbm [shape: f32[8,256], index: 3, kind: output, shape index: {}]  }
   0x1   :  { %9 = vsyncpa [#allocation6], 0 }
   0x2   :  { %10 = vsyncpa [#allocation4], 0  ;;  %s318_s12 = smov [#allocation2]   ;;  %s319_s14 = smov [#allocation5]  }
   0x3   :  { %s17_s13 = sshll.u32 %s318_s12, 4  ;;  %s26_s15 = sshll.u32 %s319_s14, 4  ;;  %s18_s13 = int_to_ptr.vmem [resolvable:$true] %s17_s13  ;;  %s343_s15 = int_to_ptr.vmem [resolvable:$true] %s26_s15 }
   0x4   :  { %s246_s18 = scalar_lea.hbm %s389_s0, 128 }
   0x5   :  { %p247_p0 = scmp.ne.s32.totalorder %s389_s0, %s246_s18  ;;  %p250_p1 = scmp.lt.u32.totalorder %s246_s18, %s389_s0 }
   0x7   :  { %p252_p2 = pnand %p250_p1, %p247_p0 }
   0x9   :  { %255 = shalt.err (!%p252_p2)
}
   0xa   :  { %s256_s23 = scalar_lea.vmem %s18_s13, 128  ;;  %p261_p4 = scmp.lt.s32.totalorder %s18_s13, %s18_s13 }
   0xb   :  { %p257_p3 = scmp.ne.s32.totalorder %s18_s13, %s256_s23  ;;  %p262_p5 = scmp.lt.s32.totalorder %s256_s23, %s256_s23 }
   0xd   :  { %p263_p6 = por %p262_p5, %p261_p4 }
   0xf   :  { %p264_p7 = pnand %p263_p6, %p257_p3 }
  0x11   :  { %267 = shalt.err (!%p264_p7)
}
  0x12   :  { %20 = dma.hbm_to_vmem [thread:$0]  %s389_s0, 128, %s18_s13, [#allocation3]  }
  0x13   :  { %s268_s28 = scalar_lea.hbm %s390_s1, 4096 }
  0x14   :  { %p269_p8 = scmp.ne.s32.totalorder %s390_s1, %s268_s28  ;;  %p272_p9 = scmp.lt.u32.totalorder %s268_s28, %s390_s1 }
  0x16   :  { %p274_p10 = pnand %p272_p9, %p269_p8 }
  0x18   :  { %277 = shalt.err (!%p274_p10)
}
  0x19   :  { %s278_s6 = scalar_lea.vmem %s343_s15, 4096  ;;  %p283_p12 = scmp.lt.s32.totalorder %s343_s15, %s343_s15 }
  0x1a   :  { %p279_p11 = scmp.ne.s32.totalorder %s343_s15, %s278_s6  ;;  %p284_p13 = scmp.lt.s32.totalorder %s278_s6, %s278_s6 }
  0x1c   :  { %p285_p0 = por %p284_p13, %p283_p12 }
  0x1e   :  { %p286_p1 = pnand %p285_p0, %p279_p11 }
  0x20   :  { %289 = shalt.err (!%p286_p1)
}
  0x21   :  { %s320_s0 = smov 128   ;;  %s321_s7 = smov 8  }
  0x22   :  { %32 = dma.hbm_to_vmem [thread:$0]  %s390_s1, 4096, %s343_s15, [#allocation6], %s320_s0, %s320_s0, %s321_s7  }
  0x23   :  { %312 = dma.done.wait [#allocation3], 128  }
  0x24   :  { %313 = vsyncadd [#allocation3], 4294967168 }
  0x25   :  { %314 = dma.done.wait [#allocation6], 4096  }
  0x26   :  { %315 = vsyncadd [#allocation6], 4294963200  ;;  %v58_v0 = vld [vmem:[#allocation5 + $0x80] sm:$0xff]  ;;  %v59_v1 = vld [vmem:[#allocation5 + $0x88] sm:$0xff]  ;;  %v76_v49 = vlaneseq  ;;  %s322_s11 = smov [#allocation7]  }
  0x27   :  { %v42_v2 = vld [vmem:[#allocation5] sm:$0xff]  ;;  %v209_v3 = vpack.c.bf16 %v59_v1, %v58_v0  ;;  %v43_v4 = vld [vmem:[#allocation5 + $0x8] sm:$0xff]  ;;  %v60_v5 = vld [vmem:[#allocation5 + $0x90] sm:$0xff]  ;;  %s165_s12 = sshll.u32 %s322_s11, 4  ;;  %s166_s12 = int_to_ptr.vmem [resolvable:$true] %s165_s12 }
  0x28   :  { %v61_v6 = vld [vmem:[#allocation5 + $0x98] sm:$0xff]  ;;  %v211_v7 = vpack.c.bf16 %v43_v4, %v42_v2  ;;  %v44_v9 = vld [vmem:[#allocation5 + $0x10] sm:$0xff]  ;;  %v62_v11 = vld [vmem:[#allocation5 + $0xa0] sm:$0xff]  ;;  %v77_v50 = vshrl.u32 %v76_v49, 7  ;;  %s290_s13 = scalar_lea.vmem %s166_s12, 256  ;;  %p295_p3 = scmp.lt.s32.totalorder %s166_s12, %s166_s12 }
  0x29   :  { %v213_v8 = vpack.c.bf16 %v61_v6, %v60_v5  ;;  %210 = vmatprep.subr.bf16.mxu0 %v209_v3  ;;  %v45_v10 = vld [vmem:[#allocation5 + $0x18] sm:$0xff]  ;;  %v63_v12 = vld [vmem:[#allocation5 + $0xa8] sm:$0xff]  ;;  %v46_v16 = vld [vmem:[#allocation5 + $0x20] sm:$0xff]  ;;  %p291_p2 = scmp.ne.s32.totalorder %s166_s12, %s290_s13  ;;  %p296_p4 = scmp.lt.s32.totalorder %s290_s13, %s290_s13 }
  0x2a   :  { %212 = vmatpush3.bf16.xpose.msra.mxu0 %v211_v7  ;;  %v215_v13 = vpack.c.bf16 %v45_v10, %v44_v9  ;;  %v217_v14 = vpack.c.bf16 %v63_v12, %v62_v11  ;;  %v41_v15 = vld [vmem:[#allocation2] sm:$0xff]  ;;  %v47_v17 = vld [vmem:[#allocation5 + $0x28] sm:$0xff]  ;;  %v64_v18 = vld [vmem:[#allocation5 + $0xb0] sm:$0xff]  ;;  %v78_v51 = vsub.s32 0, %v77_v50  ;;  %v82_v53 = vsub.s32 1, %v77_v50 }
  0x2b   :  { %214 = vmatprep.subr.bf16.mxu0 %v213_v8  ;;  %207 = vmatprep.mubr.f32.mxu0 %v41_v15  ;;  %v65_v19 = vld [vmem:[#allocation5 + $0xb8] sm:$0xff]  ;;  %v219_v20 = vpack.c.bf16 %v47_v17, %v46_v16  ;;  %v48_v22 = vld [vmem:[#allocation5 + $0x30] sm:$0xff]  ;;  %v66_v24 = vld [vmem:[#allocation5 + $0xc0] sm:$0xff]  ;;  %p297_p5 = por %p296_p4, %p295_p3 }
  0x2c   :  { %v221_v21 = vpack.c.bf16 %v65_v19, %v64_v18  ;;  %v49_v23 = vld [vmem:[#allocation5 + $0x38] sm:$0xff]  ;;  %v67_v25 = vld [vmem:[#allocation5 + $0xc8] sm:$0xff]  ;;  %v50_v28 = vld [vmem:[#allocation5 + $0x40] sm:$0xff] }
  0x2d   :  { %v223_v26 = vpack.c.bf16 %v49_v23, %v48_v22  ;;  %v225_v27 = vpack.c.bf16 %v67_v25, %v66_v24  ;;  %v51_v29 = vld [vmem:[#allocation5 + $0x48] sm:$0xff]  ;;  %v68_v30 = vld [vmem:[#allocation5 + $0xd0] sm:$0xff]  ;;  %v69_v31 = vld [vmem:[#allocation5 + $0xd8] sm:$0xff]  ;;  %p298_p6 = pnand %p297_p5, %p291_p2 }
  0x2e   :  { %v227_v32 = vpack.c.bf16 %v51_v29, %v50_v28  ;;  %v229_v33 = vpack.c.bf16 %v69_v31, %v68_v30  ;;  %v52_v34 = vld [vmem:[#allocation5 + $0x50] sm:$0xff]  ;;  %v53_v35 = vld [vmem:[#allocation5 + $0x58] sm:$0xff]  ;;  %v70_v36 = vld [vmem:[#allocation5 + $0xe0] sm:$0xff] }
  0x2f   :  { %v71_v37 = vld [vmem:[#allocation5 + $0xe8] sm:$0xff]  ;;  %v231_v38 = vpack.c.bf16 %v53_v35, %v52_v34  ;;  %v54_v40 = vld [vmem:[#allocation5 + $0x60] sm:$0xff]  ;;  %v72_v42 = vld [vmem:[#allocation5 + $0xf0] sm:$0xff] }
  0x30   :  { %v233_v39 = vpack.c.bf16 %v71_v37, %v70_v36  ;;  %v55_v41 = vld [vmem:[#allocation5 + $0x68] sm:$0xff]  ;;  %v73_v43 = vld [vmem:[#allocation5 + $0xf8] sm:$0xff]  ;;  %v56_v46 = vld [vmem:[#allocation5 + $0x70] sm:$0xff] }
  0x31   :  { %v235_v44 = vpack.c.bf16 %v55_v41, %v54_v40  ;;  %v237_v45 = vpack.c.bf16 %v73_v43, %v72_v42  ;;  %v57_v47 = vld [vmem:[#allocation5 + $0x78] sm:$0xff] }
  0x32   :  { %216 = vmatpush3.bf16.xpose.msra.mxu0 %v215_v13  ;;  %v239_v48 = vpack.c.bf16 %v57_v47, %v56_v46  ;;  %v74_v52 = vld [vmem:[%s391_s2] sm:$0x3] }
  0x33   :  { %218 = vmatprep.subr.bf16.mxu0 %v217_v14  ;;  %v79_v54 = vrot.slane %v74_v52, %v78_v51  ;;  %v83_v55 = vrot.slane %v74_v52, %v82_v53 }
  0x3a   :  { %220 = vmatpush3.bf16.xpose.msra.mxu0 %v219_v20 }
  0x3b   :  { %222 = vmatprep.subr.bf16.mxu0 %v221_v21 }
  0x42   :  { %224 = vmatpush3.bf16.xpose.msra.mxu0 %v223_v26 }
  0x43   :  { %226 = vmatprep.subr.bf16.mxu0 %v225_v27 }
  0x4a   :  { %228 = vmatpush3.bf16.xpose.msra.mxu0 %v227_v32 }
  0x4b   :  { %230 = vmatprep.subr.bf16.mxu0 %v229_v33 }
  0x52   :  { %232 = vmatpush3.bf16.xpose.msra.mxu0 %v231_v38 }
  0x53   :  { %234 = vmatprep.subr.bf16.mxu0 %v233_v39 }
  0x5a   :  { %236 = vmatpush3.bf16.xpose.msra.mxu0 %v235_v44 }
  0x5b   :  { %238 = vmatprep.subr.bf16.mxu0 %v237_v45 }
  0x62   :  { %240 = vmatpush3.bf16.xpose.msra.mxu0 %v239_v48 }
  0x69   :  { %208 = vmatmul.mubr.f32.vlgmr.msra.gmra.mrb[0].mxu0 %v41_v15 }
 0x13c   :  { %v152_v56 = vpop.f32.mrb[0].mxu0 }
 0x13d   :  { %v153_v57 = vadd.f32 %v152_v56, %v79_v54  ;;  %v154_v58 = vpop.f32.mrb[1].mxu0 }
 0x13e   :  { %v155_v59 = vadd.f32 %v154_v58, %v83_v55 }
 0x13f   :  { %157 = vst [vmem:[#allocation7] sm:$0xff] %v153_v57 }
 0x140   :  { %158 = vst [vmem:[#allocation7 + $0x8] sm:$0xff] %v155_v59 }
 0x141   :  { %301 = shalt.err (!%p298_p6)
}
 0x142   :  { %s302_s15 = scalar_lea.hbm %s392_s3, 256 }
 0x143   :  { %p303_p7 = scmp.ne.s32.totalorder %s392_s3, %s302_s15  ;;  %p306_p8 = scmp.lt.u32.totalorder %s302_s15, %s392_s3 }
 0x145   :  { %p308_p9 = pnand %p306_p8, %p303_p7 }
 0x147   :  { %311 = shalt.err (!%p308_p9)
}
 0x148   :  { %168 = dma.vmem_to_hbm [thread:$0]  %s166_s12, 256, %s392_s3, [#allocation4]  }
 0x149   :  { %316 = dma.done.wait [#allocation4], 256  }
 0x14a   :  { %317 = vsyncadd [#allocation4], 4294967040 }
 0x14b   :  { %172 = vsyncpa [#allocation3], 1 }
 0x14c   :  { %173 = vsyncpa [#allocation6], 1 }
 0x14d   :  { %174 = vsyncpa [#allocation4], 1 }

</bundles_post_ra>
